<compile_context>
chip_gen: v7x
topology: tpu7x:2x2x1
jax: 0.10.0
libtpu: 0.0.40
codegen_flags: <defaults>
</compile_context>

<pallas_src>
import functools

import jax
import jax.numpy as jnp
from jax import lax
from jax.experimental import pallas as pl
from jax.experimental.pallas import tpu as pltpu


def _round_up(x, m):
    return (x + m - 1) // m * m


def _default_parts():
    # v7x-class chips have 2 TensorCores per chip; v5e/v6e have 1.  On a
    # single-TC chip an extra "parallel" part is just a serial split, so
    # default to 1 unless we can tell we are on a multi-TC part.
    try:
        kind = jax.devices()[0].device_kind.lower()
    except Exception:
        return 1
    return 2 if ("v7" in kind or "tpu7" in kind) else 1


def _efocal_kernel(x_ref, t_ref, a_ref, out_ref, acc_ref, *,
                   gamma, inv_denom, n_valid, tm):
    part = pl.program_id(0)
    it = pl.program_id(1)
    n_inner = pl.num_programs(1)

    @pl.when(it == 0)
    def _():
        acc_ref[...] = jnp.zeros_like(acc_ref)

    x = x_ref[...].astype(jnp.float32)        # (TM, C) logits, classes on lanes
    t = t_ref[...]                            # (TM, 1) int32 targets
    alpha = a_ref[...].astype(jnp.float32)    # (1, C) per-class alpha

    onehot = lax.broadcasted_iota(jnp.int32, x.shape, 1) == t          # (TM, C)

    # log-sum-exp softmax of the target class only (no divide, no full p tensor)
    m = jnp.max(x, axis=1, keepdims=True)                              # (TM, 1)
    s = jnp.sum(jnp.exp(x - m), axis=1, keepdims=True)                 # (TM, 1)
    x_t = jnp.sum(jnp.where(onehot, x, 0.0), axis=1, keepdims=True)    # x[target]
    a_t = jnp.sum(jnp.where(onehot, alpha, 0.0), axis=1, keepdims=True)  # alpha[target]

    log_p = x_t - m - jnp.log(s)                                       # (TM, 1)
    probs = jnp.exp(log_p)                                             # softmax(x)[target]
    loss = -a_t * jnp.exp(-gamma * probs) * log_p                      # (TM, 1)

    # Mask the ragged last tile / duplicated clamped tiles.  Must stay BEFORE
    # the sum: out-of-bounds rows may contain inf/NaN garbage.
    base = (part * n_inner + it) * tm
    row = lax.broadcasted_iota(jnp.int32, loss.shape, 0)
    loss = jnp.where(base + row < n_valid, loss, 0.0)

    acc_ref[...] += jnp.sum(loss, axis=0, keepdims=True)

    @pl.when(it == n_inner - 1)
    def _():
        out_ref[0] = acc_ref[...] * inv_denom


def efocal_loss(inputs, targets, alpha=None, *, gamma=2.0, size_average=True,
                tm=None, parts=None):
    """inputs: (N, C) float logits (f32 or bf16); targets: (N,) int;
    alpha: (C,) / (C,1) float or None (-> ones, matching torch.ones(class_num, 1))."""
    N, C = inputs.shape
    if inputs.dtype not in (jnp.float32, jnp.bfloat16):
        inputs = inputs.astype(jnp.float32)
    if alpha is None:
        alpha = jnp.ones((C,), jnp.float32)
    alpha2d = jnp.asarray(alpha, jnp.float32).reshape(1, C)
    t2d = jnp.asarray(targets, jnp.int32).reshape(N, 1)

    if parts is None:
        parts = _default_parts()
    parts = max(1, int(parts))

    # --- tile size from a per-generation-safe VMEM budget -------------------
    x_itemsize = jnp.dtype(inputs.dtype).itemsize
    c_pad = _round_up(C, 128)                        # lanes per row in padded HBM/VMEM layout
    per_row = 2 * (c_pad * x_itemsize + 128 * 4)     # double-buffered x row + int32 target row
    if tm is None:
        budget = 12 * 1024 * 1024                    # fits v5e's 16 MiB default scoped VMEM
        tm = max(128, min(2048, budget // per_row // 128 * 128))
    tm = int(tm)
    align = 16 if x_itemsize == 2 else 8
    if tm >= N:
        tm = N                                       # single block == full dim (any N allowed)
    else:
        tm = max(align, tm // align * align)         # second-minor dim must be tile-aligned

    inner = pl.cdiv(N, parts * tm)
    last_blk = pl.cdiv(N, tm) - 1                    # clamp parts whose range over-runs the batch

    def x_map(p, i):
        return (jnp.minimum(p * inner + i, last_blk), 0)

    def t_map(p, i):
        return (jnp.minimum(p * inner + i, last_blk), 0)

    tm8 = _round_up(tm, align)
    vmem_need = (2 * tm8 * c_pad * x_itemsize        # x double buffer
                 + 2 * tm8 * 128 * 4                 # target double buffer (lane-padded)
                 + 2 * 8 * c_pad * 4                 # alpha
                 + 16 * 1024)                        # accumulator / output slack
    vmem_limit = int(min(max(vmem_need + (4 << 20), 16 << 20), 48 << 20))

    if parts > 1:
        # v7x: put the two partial reductions on the two TensorCores.
        semantics = (pltpu.CORE_PARALLEL, pltpu.ARBITRARY)
    else:
        semantics = (pltpu.ARBITRARY, pltpu.ARBITRARY)

    cost = pl.CostEstimate(
        flops=int(6 * N * C + 10 * N),
        transcendentals=int(N * C + 2 * N),
        bytes_accessed=int(N * C * x_itemsize + N * 4 + C * 4 + parts * 4),
    )

    kernel = functools.partial(
        _efocal_kernel,
        gamma=float(gamma),
        inv_denom=(1.0 / N) if size_average else 1.0,
        n_valid=N,
        tm=tm,
    )

    parts_out = pl.pallas_call(
        kernel,
        out_shape=jax.ShapeDtypeStruct((parts, 1, 1), jnp.float32),
        grid=(parts, inner),
        in_specs=[
            pl.BlockSpec((tm, C), x_map),
            pl.BlockSpec((tm, 1), t_map),
            pl.BlockSpec((1, C), lambda p, i: (0, 0)),
        ],
        out_specs=pl.BlockSpec((1, 1, 1), lambda p, i: (p, 0, 0)),
        scratch_shapes=[pltpu.VMEM((1, 1), jnp.float32)],
        compiler_params=pltpu.CompilerParams(
            dimension_semantics=semantics,
            vmem_limit_bytes=vmem_limit),
        cost_estimate=cost,
    )(inputs, t2d, alpha2d)
    return jnp.sum(parts_out)


def efocal_loss_ref(inputs, targets, alpha, *, gamma=2.0, size_average=True):
    # Pure-JAX reference matching the PyTorch forward.
    p = jax.nn.softmax(inputs.astype(jnp.float32), axis=1)
    onehot = jax.nn.one_hot(targets, inputs.shape[1], dtype=jnp.float32)
    probs = jnp.sum(p * onehot, axis=1, keepdims=True)
    a = jnp.asarray(alpha, jnp.float32).reshape(-1)[targets].reshape(-1, 1)
    batch_loss = -a * jnp.exp(-gamma * probs) * jnp.log(probs)
    return jnp.mean(batch_loss) if size_average else jnp.sum(batch_loss)


if __name__ == "__main__":
    key = jax.random.PRNGKey(0)
    k1, k2, k3, k4, k5 = jax.random.split(key, 5)

    # Case 1: module defaults (alpha=None -> ones, size_average=True), tiny batch.
    N, C = 8, 4
    inputs = jax.random.normal(k1, (N, C), dtype=jnp.float32)
    targets = jax.random.randint(k2, (N,), 0, C, dtype=jnp.int32)
    loss = jax.block_until_ready(
        efocal_loss(inputs, targets, None, gamma=2.0, size_average=True))
    ref = efocal_loss_ref(inputs, targets, jnp.ones((C,), jnp.float32),
                          gamma=2.0, size_average=True)
    assert jnp.allclose(loss, ref, rtol=1e-5, atol=1e-6), (loss, ref)

    # Case 2: multi-tile grid (accumulator + ragged last tile), non-uniform alpha,
    # sum reduction, N not a multiple of the tile.
    N2, C2 = 300, 21
    inputs2 = 4.0 * jax.random.normal(k3, (N2, C2), dtype=jnp.float32)
    targets2 = jax.random.randint(k4, (N2,), 0, C2, dtype=jnp.int32)
    alpha2 = jax.random.uniform(k5, (C2,), dtype=jnp.float32, minval=0.25, maxval=1.0)
    loss2 = jax.block_until_ready(
        efocal_loss(inputs2, targets2, alpha2, gamma=2.0, size_average=False, tm=128))
    ref2 = efocal_loss_ref(inputs2, targets2, alpha2, gamma=2.0, size_average=False)
    assert jnp.allclose(loss2, ref2, rtol=1e-4, atol=1e-4), (loss2, ref2)

    # Case 3: bf16-in-HBM path (halves DMA bytes); reference uses the same
    # bf16-quantized logits so only the kernel's internal f32 math is compared.
    inputs2_bf16 = inputs2.astype(jnp.bfloat16)
    loss3 = jax.block_until_ready(
        efocal_loss(inputs2_bf16, targets2, alpha2, gamma=2.0, size_average=True))
    ref3 = efocal_loss_ref(inputs2_bf16, targets2, alpha2, gamma=2.0, size_average=True)
    assert jnp.allclose(loss3, ref3, rtol=5e-3, atol=5e-3), (loss3, ref3)

    print("KERNEL_OK")
</pallas_src>

<mosaic_0001>
module attributes {stable_mosaic.version = 11 : i64} {
  func.func @_efocal_kernel(%arg0: i32, %arg1: i32, %arg2: memref<8x4xf32, #tpu.memory_space<vmem>>, %arg3: memref<8x1xi32, #tpu.memory_space<vmem>>, %arg4: memref<1x4xf32, #tpu.memory_space<vmem>>, %arg5: memref<1x1x1xf32, #tpu.memory_space<vmem>>, %arg6: memref<1x1xf32, #tpu.memory_space<vmem>>) attributes {dimension_semantics = [#tpu.dimension_semantics<arbitrary>, #tpu.dimension_semantics<arbitrary>], iteration_bounds = array<i64: 1, 1>, scalar_prefetch = 0 : i64, scratch_operands = 1 : i64, tpu.core_type = #tpu.core_type<tc>, window_params = [{transform_indices = @transform_0, window_bounds = array<i64: 8, 4>}, {transform_indices = @transform_1, window_bounds = array<i64: 8, 1>}, {pipeline_mode = #tpu.pipeline_mode<synchronous>, transform_indices = @transform_2, window_bounds = array<i64: 1, 4>}, {transform_indices = @transform_3, window_bounds = array<i64: 1, 1, 1>}]} {
    %c0_i32 = arith.constant 0 : i32
    %0 = arith.cmpi eq, %arg1, %c0_i32 : i32
    %1 = arith.extui %0 : i1 to i32
    %c0_i32_0 = arith.constant 0 : i32
    %2 = arith.cmpi ne, %1, %c0_i32_0 : i32
    scf.if %2 {
      %cst_22 = arith.constant 0.000000e+00 : f32
      %55 = vector.broadcast %cst_22 : f32 to vector<1x1xf32>
      %c0_23 = arith.constant 0 : index
      %c0_24 = arith.constant 0 : index
      %56 = vector.load %arg6[%c0_23, %c0_24] : memref<1x1xf32, #tpu.memory_space<vmem>>, vector<1x1xf32>
      tpu.vector_store %arg6[%c0_23, %c0_24], %55 {strides = array<i32>} : memref<1x1xf32, #tpu.memory_space<vmem>>, vector<1x1xf32>,
    } else {
    }
    %c0 = arith.constant 0 : index
    %c0_1 = arith.constant 0 : index
    %3 = vector.load %arg2[%c0, %c0_1] : memref<8x4xf32, #tpu.memory_space<vmem>>, vector<8x4xf32>
    %c0_2 = arith.constant 0 : index
    %c0_3 = arith.constant 0 : index
    %4 = vector.load %arg3[%c0_2, %c0_3] : memref<8x1xi32, #tpu.memory_space<vmem>>, vector<8x1xi32>
    %c0_4 = arith.constant 0 : index
    %c0_5 = arith.constant 0 : index
    %5 = vector.load %arg4[%c0_4, %c0_5] : memref<1x4xf32, #tpu.memory_space<vmem>>, vector<1x4xf32>
    %6 = tpu.iota {dimensions = array<i32: 1>} : vector<8x4xi32>
    %7 = vector.broadcast %4 : vector<8x1xi32> to vector<8x4xi32>
    %8 = arith.cmpi eq, %6, %7 : vector<8x4xi32>
    %cst = arith.constant dense<0xFF800000> : vector<8xf32>
    %9 = vector.multi_reduction <maximumf>, %3, %cst [1] : vector<8x4xf32> to vector<8xf32>
    %10 = vector.shape_cast %9 : vector<8xf32> to vector<8x1xf32>
    %11 = vector.broadcast %10 : vector<8x1xf32> to vector<8x4xf32>
    %12 = arith.subf %3, %11 : vector<8x4xf32>
    %13 = math.exp %12 : vector<8x4xf32>
    %cst_6 = arith.constant dense<0.000000e+00> : vector<8xf32>
    %14 = vector.multi_reduction <add>, %13, %cst_6 [1] : vector<8x4xf32> to vector<8xf32>
    %15 = vector.shape_cast %14 : vector<8xf32> to vector<8x1xf32>
    %cst_7 = arith.constant 0.000000e+00 : f32
    %16 = vector.broadcast %cst_7 : f32 to vector<8x4xf32>
    %17 = arith.select %8, %3, %16 : vector<8x4xi1>, vector<8x4xf32>
    %cst_8 = arith.constant dense<0.000000e+00> : vector<8xf32>
    %18 = vector.multi_reduction <add>, %17, %cst_8 [1] : vector<8x4xf32> to vector<8xf32>
    %19 = vector.shape_cast %18 : vector<8xf32> to vector<8x1xf32>
    %cst_9 = arith.constant 0.000000e+00 : f32
    %20 = vector.shape_cast %5 : vector<1x4xf32> to vector<1x4xf32>
    %21 = vector.broadcast %20 : vector<1x4xf32> to vector<8x4xf32>
    %22 = vector.broadcast %cst_9 : f32 to vector<8x4xf32>
    %23 = arith.select %8, %21, %22 : vector<8x4xi1>, vector<8x4xf32>
    %cst_10 = arith.constant dense<0.000000e+00> : vector<8xf32>
    %24 = vector.multi_reduction <add>, %23, %cst_10 [1] : vector<8x4xf32> to vector<8xf32>
    %25 = vector.shape_cast %24 : vector<8xf32> to vector<8x1xf32>
    %26 = arith.subf %19, %10 : vector<8x1xf32>
    %27 = math.log %15 : vector<8x1xf32>
    %28 = arith.subf %26, %27 : vector<8x1xf32>
    %29 = math.exp %28 : vector<8x1xf32>
    %cst_11 = arith.constant 0.000000e+00 : f32
    %30 = vector.broadcast %cst_11 : f32 to vector<8x1xf32>
    %31 = arith.subf %30, %25 : vector<8x1xf32>
    %cst_12 = arith.constant -2.000000e+00 : f32
    %32 = vector.broadcast %cst_12 : f32 to vector<8x1xf32>
    %33 = arith.mulf %32, %29 : vector<8x1xf32>
    %34 = math.exp %33 : vector<8x1xf32>
    %35 = arith.mulf %31, %34 : vector<8x1xf32>
    %36 = arith.mulf %35, %28 : vector<8x1xf32>
    %c1_i32 = arith.constant 1 : i32
    %37 = arith.muli %arg0, %c1_i32 : i32
    %38 = arith.addi %37, %arg1 : i32
    %c8_i32 = arith.constant 8 : i32
    %39 = arith.muli %38, %c8_i32 : i32
    %40 = tpu.iota {dimensions = array<i32: 0>} : vector<8x1xi32>
    %41 = vector.broadcast %39 : i32 to vector<8x1xi32>
    %42 = arith.addi %41, %40 : vector<8x1xi32>
    %c8_i32_13 = arith.constant 8 : i32
    %43 = vector.broadcast %c8_i32_13 : i32 to vector<8x1xi32>
    %44 = arith.cmpi slt, %42, %43 : vector<8x1xi32>
    %cst_14 = arith.constant 0.000000e+00 : f32
    %45 = vector.broadcast %cst_14 : f32 to vector<8x1xf32>
    %46 = arith.select %44, %36, %45 : vector<8x1xi1>, vector<8x1xf32>
    %c0_15 = arith.constant 0 : index
    %c0_16 = arith.constant 0 : index
    %47 = vector.load %arg6[%c0_15, %c0_16] : memref<1x1xf32, #tpu.memory_space<vmem>>, vector<1x1xf32>
    %cst_17 = arith.constant dense<0.000000e+00> : vector<1xf32>
    %48 = vector.multi_reduction <add>, %46, %cst_17 [0] : vector<8x1xf32> to vector<1xf32>
    %49 = vector.shape_cast %48 : vector<1xf32> to vector<1x1xf32>
    %50 = arith.addf %47, %49 : vector<1x1xf32>
    %c0_18 = arith.constant 0 : index
    %c0_19 = arith.constant 0 : index
    %51 = vector.load %arg6[%c0_18, %c0_19] : memref<1x1xf32, #tpu.memory_space<vmem>>, vector<1x1xf32>
    tpu.vector_store %arg6[%c0_18, %c0_19], %50 {strides = array<i32>} : memref<1x1xf32, #tpu.memory_space<vmem>>, vector<1x1xf32>,
    %c0_i32_20 = arith.constant 0 : i32
    %52 = arith.cmpi eq, %arg1, %c0_i32_20 : i32
    %53 = arith.extui %52 : i1 to i32
    %c0_i32_21 = arith.constant 0 : i32
    %54 = arith.cmpi ne, %53, %c0_i32_21 : i32
    scf.if %54 {
      %c0_22 = arith.constant 0 : index
      %c0_23 = arith.constant 0 : index
      %55 = vector.load %arg6[%c0_22, %c0_23] : memref<1x1xf32, #tpu.memory_space<vmem>>, vector<1x1xf32>
      %cst_24 = arith.constant 1.250000e-01 : f32
      %56 = vector.broadcast %cst_24 : f32 to vector<1x1xf32>
      %57 = arith.mulf %55, %56 : vector<1x1xf32>
      %c0_25 = arith.constant 0 : index
      %c0_26 = arith.constant 0 : index
      %c0_27 = arith.constant 0 : index
      %58 = vector.load %arg5[%c0_25, %c0_26, %c0_27] : memref<1x1x1xf32, #tpu.memory_space<vmem>>, vector<1x1x1xf32>
      %59 = vector.shape_cast %58 : vector<1x1x1xf32> to vector<1x1xf32>
      %60 = vector.shape_cast %57 : vector<1x1xf32> to vector<1x1x1xf32>
      tpu.vector_store %arg5[%c0_25, %c0_26, %c0_27], %60 {strides = array<i32>} : memref<1x1x1xf32, #tpu.memory_space<vmem>>, vector<1x1x1xf32>,
    } else {
    }
    return
  }
  func.func @transform_0(%arg0: i32, %arg1: i32) -> (i32, i32) {
    %c1_i32 = arith.constant 1 : i32
    %0 = arith.muli %arg0, %c1_i32 : i32
    %1 = arith.addi %0, %arg1 : i32
    %c0_i32 = arith.constant 0 : i32
    %2 = arith.minsi %1, %c0_i32 : i32
    %c0_i32_0 = arith.constant 0 : i32
    %c0_i32_1 = arith.constant 0 : i32
    return %2, %c0_i32_0 : i32, i32
  }
  func.func @transform_1(%arg0: i32, %arg1: i32) -> (i32, i32) {
    %c1_i32 = arith.constant 1 : i32
    %0 = arith.muli %arg0, %c1_i32 : i32
    %1 = arith.addi %0, %arg1 : i32
    %c0_i32 = arith.constant 0 : i32
    %2 = arith.minsi %1, %c0_i32 : i32
    %c0_i32_0 = arith.constant 0 : i32
    %c0_i32_1 = arith.constant 0 : i32
    return %2, %c0_i32_0 : i32, i32
  }
  func.func @transform_2(%arg0: i32, %arg1: i32) -> (i32, i32) {
    %c0_i32 = arith.constant 0 : i32
    %c0_i32_0 = arith.constant 0 : i32
    %c0_i32_1 = arith.constant 0 : i32
    return %c0_i32, %c0_i32_0 : i32, i32
  }
  func.func @transform_3(%arg0: i32, %arg1: i32) -> (i32, i32, i32) {
    %c0_i32 = arith.constant 0 : i32
    %c0_i32_0 = arith.constant 0 : i32
    %c0_i32_1 = arith.constant 0 : i32
    return %arg0, %c0_i32, %c0_i32_0 : i32, i32, i32
  }
}

</mosaic_0001>

<bundles_post_ra>
// kernel: tpu_custom_call.1
= control target key start
LH: loop header
LB: loop body
LE: loop exit
PB: predicated region body
PF: predicated region fallthrough
CT: control target
= control target key end

     0   :  { %vm84_vm0 = vcmask 31744   ;;  %s258_s0 = inlined_call_operand.vmem [shape: f32[8,4], index: 0, kind: input, shape index: {}]   ;;  %s259_s1 = inlined_call_operand.vmem [shape: s32[8,1], index: 1, kind: input, shape index: {}]   ;;  %s260_s2 = inlined_call_operand.vmem [shape: f32[1,4], index: 2, kind: input, shape index: {}]   ;;  %s261_s3 = inlined_call_operand.hbm [shape: f32[1,1,1], index: 3, kind: output, shape index: {}]  }
   0x1   :  { %v75_v0 = vld [vmem:[%s258_s0] sm:$0xff] }
   0x2   :  { %8 = vsyncpa [#allocation4], 0  ;;  %v85_v1 = vsel %vm84_vm0, %v75_v0, -inf  ;;  %v207_v2 = vmov 0   ;;  %v76_v3 = vld [vmem:[%s259_s1] sm:$0xff]  ;;  %v78_v7 = vlaneseq  ;;  %vm73_vm2 = vcmask 0  }
   0x3   :  { %174 = vset.pattern.permute.xlu0 %v207_v2  ;;  %v170_v13 = vld [vmem:[%s260_s2] ss:$0 sm:$0xff]  ;;  %v208_v17 = vmov 0.0   ;;  %s209_s1 = smov [#allocation3]  }
   0x4   :  { %86 = vmax.xlane.f32.xlu0 %v85_v1  ;;  %v79_v8 = vand.u32 127, %v78_v7  ;;  %74 = vst.msk [vmem:[#allocation2] sm:$0x1] %vm73_vm2, %v208_v17  ;;  %s150_s2 = sshll.u32 %s209_s1, 4  ;;  %s151_s2 = int_to_ptr.vmem [resolvable:$true] %s150_s2 }
   0x5   :  { %s183_s17 = scalar_lea.vmem %s151_s2, 16  ;;  %s187_s18 = scalar_lea.vmem %s151_s2, 32 }
   0x6   :  { %p184_p0 = scmp.ne.s32.totalorder %s151_s2, %s183_s17  ;;  %p188_p1 = scmp.lt.s32.totalorder %s151_s2, %s151_s2 }
   0x7   :  { %p189_p2 = scmp.lt.s32.totalorder %s187_s18, %s183_s17 }
   0x9   :  { %p190_p3 = por %p189_p2, %p188_p1 }
   0xb   :  { %v128_v38 = vld [vmem:[#allocation2] sm:$0x1]  ;;  %p191_p4 = pnand %p190_p3, %p184_p0 }
  0x1a   :  { %81 = vperm.xlu0 %174, %v76_v3  }
  0x91   :  { %v87_v4 = vpop.xlane.xlu0 %86 }
  0x92   :  { %v88_v5 = vsub.f32 %v75_v0, %v87_v4 }
  0x94   :  { %v89_v6 = vmul.f32 1.442695, %v88_v5 }
  0x96   :  { %175 = vpow2.f32 %v89_v6 }
  0x99   :  { %v82_v9 = vpop.permute.xlu0 %81 }
  0x9a   :  { %vm83_vm1 = vcmp.eq.s32.totalorder %v79_v8, %v82_v9 }
  0x9b   :  { %v94_v11 = vsel %vm83_vm1, %v75_v0, 0.0  ;;  %v104_v15 = vsel %vm83_vm1, %v170_v13, 0.0 }
  0x9c   :  { %v95_v14 = vsel %vm84_vm0, %v94_v11, 0.0  ;;  %v105_v16 = vsel %vm84_vm0, %v104_v15, 0.0 }
  0xa0   :  { %v176_v10 = vpop.eup %175 }
  0xa1   :  { %v91_v12 = vsel %vm84_vm0, %v176_v10, 0.0 }
  0xa2   :  { %92 = vadd.xlane.f32.xlu1 %v91_v12 }
  0xa6   :  { %96 = vadd.xlane.f32.xlu1 %v95_v14 }
  0xaa   :  { %106 = vadd.xlane.f32.xlu1 %v105_v16 }
 0x12f   :  { %v93_v18 = vpop.xlane.xlu1 %92 }
 0x130   :  { %177 = vlog2.f32 %v93_v18 }
 0x133   :  { %v97_v19 = vpop.xlane.xlu1 %96 }
 0x134   :  { %v108_v22 = vsub.f32 %v97_v19, %v87_v4 }
 0x137   :  { %v107_v28 = vpop.xlane.xlu1 %106 }
 0x138   :  { %v114_v29 = vsub.f32 0.0, %v107_v28 }
 0x13a   :  { %v178_v20 = vpop.eup %177 }
 0x13b   :  { %v110_v21 = vmul.f32 0.6931472, %v178_v20 }
 0x13d   :  { %v111_v23 = vsub.f32 %v108_v22, %v110_v21 }
 0x13f   :  { %v112_v24 = vmul.f32 1.442695, %v111_v23 }
 0x141   :  { %179 = vpow2.f32 %v112_v24 }
 0x14b   :  { %v180_v25 = vpop.eup %179 }
 0x14c   :  { %v115_v26 = vmul.f32 -2.0, %v180_v25 }
 0x14e   :  { %v116_v27 = vmul.f32 1.442695, %v115_v26 }
 0x150   :  { %181 = vpow2.f32 %v116_v27 }
 0x15a   :  { %v182_v30 = vpop.eup %181 }
 0x15b   :  { %v118_v31 = vmul.f32 %v182_v30, %v114_v29 }
 0x15d   :  { %v119_v32 = vmul.f32 %v118_v31, %v111_v23 }
 0x15f   :  { %v129_v33 = vrot.slane %v119_v32, 4 }
 0x161   :  { %v130_v34 = vadd.f32 %v129_v33, %v119_v32 }
 0x163   :  { %v131_v35 = vrot.slane %v130_v34, 2 }
 0x165   :  { %v132_v36 = vadd.f32 %v131_v35, %v130_v34 }
 0x167   :  { %v133_v37 = vrot.slane %v132_v36, 1 }
 0x169   :  { %v134_v39 = vadd.f32 %v133_v37, %v132_v36 }
 0x16b   :  { %v135_v40 = vadd.f32 %v134_v39, %v128_v38 }
 0x16d   :  { %137 = vst.msk [vmem:[#allocation2] sm:$0x1] %vm73_vm2, %v135_v40 }
 0x174   :  { %v141_v41 = vld [vmem:[#allocation2] sm:$0x1] }
 0x175   :  { %v142_v42 = vmul.f32 0.125, %v141_v41 }
 0x177   :  { %143 = vst.msk [vmem:[#allocation3] sm:$0x1] %vm73_vm2, %v142_v42 }
 0x178   :  { %194 = shalt.err (!%p191_p4)
}
 0x179   :  { %s195_s21 = scalar_lea.hbm %s261_s3, 16 }
 0x17a   :  { %p196_p5 = scmp.ne.s32.totalorder %s261_s3, %s195_s21  ;;  %p199_p6 = scmp.lt.u32.totalorder %s195_s21, %s261_s3 }
 0x17c   :  { %p201_p7 = pnand %p199_p6, %p196_p5 }
 0x17e   :  { %204 = shalt.err (!%p201_p7)
}
 0x17f   :  { %153 = dma.vmem_to_hbm [thread:$0]  %s151_s2, 16, %s261_s3, [#allocation4]  }
 0x180   :  { %205 = dma.done.wait [#allocation4], 16  }
 0x181   :  { %206 = vsyncadd [#allocation4], 4294967280 }
 0x182   :  { %157 = vsyncpa [#allocation4], 1 }

</bundles_post_ra>
